<compile_context>
chip_gen: v6e
topology: v6e:2x2x1
jax: 0.10.0
libtpu: 0.0.40
codegen_flags: <defaults>
</compile_context>

<pallas_src>
import jax
import jax.numpy as jnp
from jax.experimental import pallas as pl
from jax.experimental.pallas import tpu as pltpu

# Input budget (already including x2 for double buffering) — fits under the scoped
# VMEM default on v5e (16 MiB), v6e (32 MiB) and v7x (32 MiB).
_VMEM_INPUT_BUDGET_BYTES = 12 * 1024 * 1024


def _round_up(a, b):
    return -(-a // b) * b


def _cdiv(a, b):
    return -(-a // b)


def _bce_xla(p, g):
    """Fused-XLA BCELoss(reduction='none').mean(0).sum() (also the reference)."""
    p = p.astype(jnp.float32)
    g = g.astype(jnp.float32)
    log_p = jnp.maximum(jnp.log(p), -100.0)
    log_1mp = jnp.maximum(jnp.log(1.0 - p), -100.0)
    loss = -(g * log_p + (1.0 - g) * log_1mp)
    return loss.mean(0).sum()


def _make_kernel(*, num_tasks, tile_rows, steps_per_chunk, counts, covered,
                 binary_targets, stacked):
    """Kernel over refs: [inputs..., out(1, T, 8, 128) f32 accumulator block]."""
    need_mask = tuple(int(c) < covered for c in counts)
    any_mask = any(need_mask)

    def kernel(*refs):
        out_ref = refs[-1]                      # (1, T, 8, 128) resident over axis 1
        step = pl.program_id(1)

        @pl.when(step == 0)
        def _init():
            out_ref[...] = jnp.zeros_like(out_ref)

        if any_mask:
            # Flat element offset of this (unclamped) block; used only for masking.
            idx0 = (pl.program_id(0) * steps_per_chunk + step) * (tile_rows * 128)
            sub = (jax.lax.broadcasted_iota(jnp.int32, (8, 128), 0) * 128
                   + jax.lax.broadcasted_iota(jnp.int32, (8, 128), 1))

        for t in range(num_tasks):
            if stacked:
                def load_p(r, t=t):
                    return refs[0][t, r:r + 8, :]

                def load_g(r, t=t):
                    return refs[1][t, r:r + 8, :]
            else:
                def load_p(r, t=t):
                    return refs[t][r:r + 8, :]

                def load_g(r, t=t):
                    return refs[num_tasks + t][r:r + 8, :]

            part = None
            for r in range(0, tile_rows, 8):
                p = load_p(r).astype(jnp.float32)
                g = load_g(r).astype(jnp.float32)
                if need_mask[t]:
                    # Valid iff global flat index < true element count.  Padded,
                    # ragged-OOB and clamped-duplicate positions become p = g = 1.0
                    # *before* the log, i.e. BCE(1, 1) == 0 (no 0 * -inf hazard).
                    mask = sub < (counts[t] - (idx0 + r * 128))
                    p = jnp.where(mask, p, 1.0)
                    g = jnp.where(mask, g, 1.0)
                if binary_targets:
                    # Single log per element; exact only for hard {0, 1} targets.
                    x = jnp.where(g > 0.5, p, 1.0 - p)
                    loss = -jnp.maximum(jnp.log(x), -100.0)
                else:
                    # torch.nn.BCELoss: each log term is clamped at -100 before the
                    # multiply, so 0 * log(0) stays finite.  Do not reorder.
                    log_p = jnp.maximum(jnp.log(p), -100.0)
                    log_1mp = jnp.maximum(jnp.log(1.0 - p), -100.0)
                    loss = -(g * log_p + (1.0 - g) * log_1mp)
                part = loss if part is None else part + loss       # VPU vreg adds only
            out_ref[0, t] = out_ref[0, t] + part

    return kernel


def _bce_multi_task_pallas(logits_list, gts_list, *, binary_targets, max_tile_rows,
                           stack_threshold):
    num_tasks = len(logits_list)
    assert num_tasks > 0 and len(gts_list) == num_tasks
    counts = [int(x.size) for x in logits_list]
    batch = [int(x.shape[0]) for x in logits_list]

    # Lane-dense layout: flatten to (rows, 128).  Pad only to a 1024-element (8x128)
    # multiple — zero-copy whenever size is already a multiple of 1024.
    n_pad = max(1024, _round_up(max(counts), 1024))
    rows_arr = n_pad // 128                                   # multiple of 8, >= 8

    def prep(x):
        flat = x.reshape(-1)
        n = int(flat.shape[0])
        if n != n_pad:
            # Pad value 1.0 => BCE(1, 1) == 0; the padded region is masked anyway.
            flat = jnp.pad(flat, (0, n_pad - n), constant_values=1)
        return flat.reshape(rows_arr, 128)

    stacked = num_tasks > stack_threshold
    if stacked:
        # Large T: 2 DMAs per grid step instead of 2T (one-time stack copy accepted).
        ins = [jnp.stack([prep(x) for x in logits_list]),
               jnp.stack([prep(g) for g in gts_list])]
        itemsizes = [ins[0].dtype.itemsize] * num_tasks + \
                    [ins[1].dtype.itemsize] * num_tasks
    else:
        ins = [prep(x) for x in logits_list] + [prep(g) for g in gts_list]
        itemsizes = [a.dtype.itemsize for a in ins]

    # Tile sizing by actual streamed bytes (x2 for double buffering).
    bytes_per_row = 128 * sum(itemsizes)
    rows_budget = max(8, (_VMEM_INPUT_BUDGET_BYTES // (2 * bytes_per_row)) // 8 * 8)
    tile_rows = max(8, (min(int(max_tile_rows), rows_budget, rows_arr) // 8) * 8)

    total_steps = _cdiv(rows_arr, tile_rows)
    num_chunks = 2 if total_steps >= 2 else 1                 # megacore split (v7x)
    steps_per_chunk = _cdiv(total_steps, num_chunks)
    covered = num_chunks * steps_per_chunk * tile_rows * 128
    last_block = total_steps - 1

    def row_map(c, n, spc=steps_per_chunk, lb=last_block):
        # Clamp so no block is ever fully out of bounds; duplicated tail blocks are
        # masked to zero contribution in the kernel.
        return jnp.minimum(c * spc + n, lb)

    if stacked:
        in_specs = [pl.BlockSpec((num_tasks, tile_rows, 128),
                                 lambda c, n: (0, row_map(c, n), 0))] * 2
    else:
        in_specs = [pl.BlockSpec((tile_rows, 128),
                                 lambda c, n: (row_map(c, n), 0))] * (2 * num_tasks)
    out_specs = pl.BlockSpec((1, num_tasks, 8, 128), lambda c, n: (c, 0, 0, 0))

    kernel = _make_kernel(num_tasks=num_tasks, tile_rows=tile_rows,
                          steps_per_chunk=steps_per_chunk, counts=counts,
                          covered=covered, binary_targets=binary_targets,
                          stacked=stacked)

    partials = pl.pallas_call(
        kernel,
        out_shape=jax.ShapeDtypeStruct((num_chunks, num_tasks, 8, 128), jnp.float32),
        grid=(num_chunks, steps_per_chunk),
        in_specs=in_specs,
        out_specs=out_specs,
        compiler_params=pltpu.CompilerParams(
            dimension_semantics=("parallel", "arbitrary")),
    )(*ins)

    inv_batch = jnp.asarray([1.0 / float(b) for b in batch], jnp.float32)
    # .mean(0).sum() over [B, ...] == total sum / B.
    return partials.sum(axis=(0, 2, 3)) * inv_batch


def celeba_loss(logits, gts, active_task=None, *, binary_targets=False,
                max_tile_rows=1024, force_pallas=False,
                small_input_threshold=64 * 1024, stack_threshold=16):
    """JAX/Pallas equivalent of CelebaLoss.forward.

    - active_task is not None: `logits` is a single probability tensor, `gts` a list
      of targets; returns a scalar.
    - active_task is None: `logits`/`gts` are length-T lists; returns [T] losses.
    Keep inputs in their narrow dtypes (e.g. bf16 targets); upcast happens in-kernel.
    """
    if active_task is not None:
        logits_list = [logits]
        gts_list = [gts[active_task]]
    else:
        logits_list = list(logits)
        gts_list = list(gts)

    max_elems = max(int(x.size) for x in logits_list)
    if not force_pallas and max_elems < small_input_threshold:
        # Tiny inputs: fixed pallas_call/DMA overhead dominates; fused XLA wins.
        out = jnp.stack([_bce_xla(p, g) for p, g in zip(logits_list, gts_list)])
    else:
        out = _bce_multi_task_pallas(
            logits_list, gts_list, binary_targets=binary_targets,
            max_tile_rows=max_tile_rows, stack_threshold=stack_threshold)
    return out[0] if active_task is not None else out


def _reference_losses(logits_list, gts_list):
    return jnp.stack([_bce_xla(p, g) for p, g in zip(logits_list, gts_list)])


if __name__ == "__main__":
    root = jax.random.PRNGKey(0)

    def make_tasks(key, T, B, D, gt_dtype=jnp.float32):
        keys = jax.random.split(key, 2 * T)
        ls, gs = [], []
        for t in range(T):
            p = jax.nn.sigmoid(jax.random.normal(keys[2 * t], (B, D), jnp.float32))
            g = jax.random.bernoulli(keys[2 * t + 1], 0.5, (B, D)).astype(gt_dtype)
            ls.append(p)
            gs.append(g)
        return ls, gs

    # 1) Small multi-task, forced through the kernel (single step, in-kernel tail mask).
    ls, gs = make_tasks(jax.random.fold_in(root, 0), 4, 8, 16)
    ref = _reference_losses(ls, gs)
    out = jax.block_until_ready(celeba_loss(ls, gs, force_pallas=True))
    assert jnp.allclose(out, ref, rtol=1e-5, atol=1e-5), (out, ref)

    # Same inputs through the small-input XLA fallback.
    out_fb = jax.block_until_ready(celeba_loss(ls, gs))
    assert jnp.allclose(out_fb, ref, rtol=1e-5, atol=1e-5), (out_fb, ref)

    # Binary-target fast path (single log/element; exact for hard {0,1} labels).
    out_bin = jax.block_until_ready(
        celeba_loss(ls, gs, binary_targets=True, force_pallas=True))
    assert jnp.allclose(out_bin, ref, rtol=1e-5, atol=1e-5), (out_bin, ref)

    # Single-task (active_task) path.
    single = jax.block_until_ready(
        celeba_loss(ls[2], gs, active_task=2, force_pallas=True))
    assert jnp.allclose(single, ref[2], rtol=1e-5, atol=1e-5), (single, ref[2])

    # 2) bf16 targets + tiny tile: multi-step grid, megacore chunking, padded tail mask.
    ls2, gs2 = make_tasks(jax.random.fold_in(root, 1), 3, 16, 96,
                          gt_dtype=jnp.bfloat16)
    ref2 = _reference_losses(ls2, gs2)
    out2 = jax.block_until_ready(
        celeba_loss(ls2, gs2, force_pallas=True, max_tile_rows=8))
    assert jnp.allclose(out2, ref2, rtol=1e-4, atol=1e-4), (out2, ref2)

    # 3) Stacked large-T path (2 DMAs per step instead of 2T).
    ls3, gs3 = make_tasks(jax.random.fold_in(root, 2), 20, 8, 8)
    ref3 = _reference_losses(ls3, gs3)
    out3 = jax.block_until_ready(
        celeba_loss(ls3, gs3, force_pallas=True, stack_threshold=16))
    assert jnp.allclose(out3, ref3, rtol=1e-5, atol=1e-5), (out3, ref3)

    # 4) Moderate size through the default path: zero-copy (size % 1024 == 0) layout,
    #    default tile sizing, unmasked fast path.
    ls4, gs4 = make_tasks(jax.random.fold_in(root, 3), 2, 1024, 64)
    ref4 = _reference_losses(ls4, gs4)
    out4 = jax.block_until_ready(celeba_loss(ls4, gs4))
    assert jnp.allclose(out4, ref4, rtol=1e-4, atol=1e-4), (out4, ref4)

    print("KERNEL_OK")
</pallas_src>

<mosaic_0001>
module attributes {stable_mosaic.version = 11 : i64} {
  func.func @kernel(%arg0: i32, %arg1: i32, %arg2: memref<8x128xf32, #tpu.memory_space<vmem>>, %arg3: memref<8x128xf32, #tpu.memory_space<vmem>>, %arg4: memref<8x128xf32, #tpu.memory_space<vmem>>, %arg5: memref<8x128xf32, #tpu.memory_space<vmem>>, %arg6: memref<8x128xf32, #tpu.memory_space<vmem>>, %arg7: memref<8x128xf32, #tpu.memory_space<vmem>>, %arg8: memref<8x128xf32, #tpu.memory_space<vmem>>, %arg9: memref<8x128xf32, #tpu.memory_space<vmem>>, %arg10: memref<1x4x8x128xf32, #tpu.memory_space<vmem>>) attributes {dimension_semantics = [#tpu.dimension_semantics<parallel>, #tpu.dimension_semantics<arbitrary>], iteration_bounds = array<i64: 1, 1>, scalar_prefetch = 0 : i64, scratch_operands = 0 : i64, tpu.core_type = #tpu.core_type<tc>, window_params = [{transform_indices = @transform_0, window_bounds = array<i64: 8, 128>}, {transform_indices = @transform_1, window_bounds = array<i64: 8, 128>}, {transform_indices = @transform_2, window_bounds = array<i64: 8, 128>}, {transform_indices = @transform_3, window_bounds = array<i64: 8, 128>}, {transform_indices = @transform_4, window_bounds = array<i64: 8, 128>}, {transform_indices = @transform_5, window_bounds = array<i64: 8, 128>}, {transform_indices = @transform_6, window_bounds = array<i64: 8, 128>}, {transform_indices = @transform_7, window_bounds = array<i64: 8, 128>}, {transform_indices = @transform_8, window_bounds = array<i64: 1, 4, 8, 128>}]} {
    %c0_i32 = arith.constant 0 : i32
    %0 = arith.cmpi eq, %arg1, %c0_i32 : i32
    %1 = arith.extui %0 : i1 to i32
    %c0_i32_0 = arith.constant 0 : i32
    %2 = arith.cmpi ne, %1, %c0_i32_0 : i32
    scf.if %2 {
      %cst_80 = arith.constant 0.000000e+00 : f32
      %135 = vector.broadcast %cst_80 : f32 to vector<1x4x8x128xf32>
      %c0_81 = arith.constant 0 : index
      %c0_82 = arith.constant 0 : index
      %c0_83 = arith.constant 0 : index
      %c0_84 = arith.constant 0 : index
      %136 = vector.load %arg10[%c0_81, %c0_82, %c0_83, %c0_84] : memref<1x4x8x128xf32, #tpu.memory_space<vmem>>, vector<1x4x8x128xf32>
      tpu.vector_store %arg10[%c0_81, %c0_82, %c0_83, %c0_84], %135 {strides = array<i32>} : memref<1x4x8x128xf32, #tpu.memory_space<vmem>>, vector<1x4x8x128xf32>,
    } else {
    }
    %c1_i32 = arith.constant 1 : i32
    %3 = arith.muli %arg0, %c1_i32 : i32
    %4 = arith.addi %3, %arg1 : i32
    %c1024_i32 = arith.constant 1024 : i32
    %5 = arith.muli %4, %c1024_i32 : i32
    %6 = tpu.iota {dimensions = array<i32: 0>} : vector<8x128xi32>
    %c128_i32 = arith.constant 128 : i32
    %7 = vector.broadcast %c128_i32 : i32 to vector<8x128xi32>
    %8 = arith.muli %6, %7 : vector<8x128xi32>
    %9 = tpu.iota {dimensions = array<i32: 1>} : vector<8x128xi32>
    %10 = arith.addi %8, %9 : vector<8x128xi32>
    %c0 = arith.constant 0 : index
    %c0_1 = arith.constant 0 : index
    %11 = vector.load %arg2[%c0, %c0_1] : memref<8x128xf32, #tpu.memory_space<vmem>>, vector<8x128xf32>
    %c0_2 = arith.constant 0 : index
    %c0_3 = arith.constant 0 : index
    %12 = vector.load %arg6[%c0_2, %c0_3] : memref<8x128xf32, #tpu.memory_space<vmem>>, vector<8x128xf32>
    %c0_i32_4 = arith.constant 0 : i32
    %13 = arith.addi %5, %c0_i32_4 : i32
    %c128_i32_5 = arith.constant 128 : i32
    %14 = arith.subi %c128_i32_5, %13 : i32
    %15 = vector.broadcast %14 : i32 to vector<8x128xi32>
    %16 = arith.cmpi slt, %10, %15 : vector<8x128xi32>
    %cst = arith.constant 1.000000e+00 : f32
    %17 = vector.broadcast %cst : f32 to vector<8x128xf32>
    %18 = arith.select %16, %11, %17 : vector<8x128xi1>, vector<8x128xf32>
    %cst_6 = arith.constant 1.000000e+00 : f32
    %19 = vector.broadcast %cst_6 : f32 to vector<8x128xf32>
    %20 = arith.select %16, %12, %19 : vector<8x128xi1>, vector<8x128xf32>
    %21 = math.log %18 : vector<8x128xf32>
    %cst_7 = arith.constant -1.000000e+02 : f32
    %22 = vector.broadcast %cst_7 : f32 to vector<8x128xf32>
    %23 = arith.maximumf %21, %22 : vector<8x128xf32>
    %cst_8 = arith.constant 1.000000e+00 : f32
    %24 = vector.broadcast %cst_8 : f32 to vector<8x128xf32>
    %25 = arith.subf %24, %18 : vector<8x128xf32>
    %26 = math.log %25 : vector<8x128xf32>
    %cst_9 = arith.constant -1.000000e+02 : f32
    %27 = vector.broadcast %cst_9 : f32 to vector<8x128xf32>
    %28 = arith.maximumf %26, %27 : vector<8x128xf32>
    %29 = arith.mulf %20, %23 : vector<8x128xf32>
    %cst_10 = arith.constant 1.000000e+00 : f32
    %30 = vector.broadcast %cst_10 : f32 to vector<8x128xf32>
    %31 = arith.subf %30, %20 : vector<8x128xf32>
    %32 = arith.mulf %31, %28 : vector<8x128xf32>
    %33 = arith.addf %29, %32 : vector<8x128xf32>
    %cst_11 = arith.constant 0.000000e+00 : f32
    %34 = vector.broadcast %cst_11 : f32 to vector<8x128xf32>
    %35 = arith.subf %34, %33 : vector<8x128xf32>
    %c0_12 = arith.constant 0 : index
    %c0_13 = arith.constant 0 : index
    %c0_14 = arith.constant 0 : index
    %c0_15 = arith.constant 0 : index
    %36 = vector.load %arg10[%c0_12, %c0_13, %c0_14, %c0_15] : memref<1x4x8x128xf32, #tpu.memory_space<vmem>>, vector<1x1x8x128xf32>
    %37 = vector.shape_cast %36 : vector<1x1x8x128xf32> to vector<8x128xf32>
    %38 = arith.addf %37, %35 : vector<8x128xf32>
    %c0_16 = arith.constant 0 : index
    %c0_17 = arith.constant 0 : index
    %c0_18 = arith.constant 0 : index
    %c0_19 = arith.constant 0 : index
    %39 = vector.load %arg10[%c0_16, %c0_17, %c0_18, %c0_19] : memref<1x4x8x128xf32, #tpu.memory_space<vmem>>, vector<1x1x8x128xf32>
    %40 = vector.shape_cast %39 : vector<1x1x8x128xf32> to vector<8x128xf32>
    %41 = vector.shape_cast %38 : vector<8x128xf32> to vector<1x1x8x128xf32>
    tpu.vector_store %arg10[%c0_16, %c0_17, %c0_18, %c0_19], %41 {strides = array<i32>} : memref<1x4x8x128xf32, #tpu.memory_space<vmem>>, vector<1x1x8x128xf32>,
    %c0_20 = arith.constant 0 : index
    %c0_21 = arith.constant 0 : index
    %42 = vector.load %arg3[%c0_20, %c0_21] : memref<8x128xf32, #tpu.memory_space<vmem>>, vector<8x128xf32>
    %c0_22 = arith.constant 0 : index
    %c0_23 = arith.constant 0 : index
    %43 = vector.load %arg7[%c0_22, %c0_23] : memref<8x128xf32, #tpu.memory_space<vmem>>, vector<8x128xf32>
    %c0_i32_24 = arith.constant 0 : i32
    %44 = arith.addi %5, %c0_i32_24 : i32
    %c128_i32_25 = arith.constant 128 : i32
    %45 = arith.subi %c128_i32_25, %44 : i32
    %46 = vector.broadcast %45 : i32 to vector<8x128xi32>
    %47 = arith.cmpi slt, %10, %46 : vector<8x128xi32>
    %cst_26 = arith.constant 1.000000e+00 : f32
    %48 = vector.broadcast %cst_26 : f32 to vector<8x128xf32>
    %49 = arith.select %47, %42, %48 : vector<8x128xi1>, vector<8x128xf32>
    %cst_27 = arith.constant 1.000000e+00 : f32
    %50 = vector.broadcast %cst_27 : f32 to vector<8x128xf32>
    %51 = arith.select %47, %43, %50 : vector<8x128xi1>, vector<8x128xf32>
    %52 = math.log %49 : vector<8x128xf32>
    %cst_28 = arith.constant -1.000000e+02 : f32
    %53 = vector.broadcast %cst_28 : f32 to vector<8x128xf32>
    %54 = arith.maximumf %52, %53 : vector<8x128xf32>
    %cst_29 = arith.constant 1.000000e+00 : f32
    %55 = vector.broadcast %cst_29 : f32 to vector<8x128xf32>
    %56 = arith.subf %55, %49 : vector<8x128xf32>
    %57 = math.log %56 : vector<8x128xf32>
    %cst_30 = arith.constant -1.000000e+02 : f32
    %58 = vector.broadcast %cst_30 : f32 to vector<8x128xf32>
    %59 = arith.maximumf %57, %58 : vector<8x128xf32>
    %60 = arith.mulf %51, %54 : vector<8x128xf32>
    %cst_31 = arith.constant 1.000000e+00 : f32
    %61 = vector.broadcast %cst_31 : f32 to vector<8x128xf32>
    %62 = arith.subf %61, %51 : vector<8x128xf32>
    %63 = arith.mulf %62, %59 : vector<8x128xf32>
    %64 = arith.addf %60, %63 : vector<8x128xf32>
    %cst_32 = arith.constant 0.000000e+00 : f32
    %65 = vector.broadcast %cst_32 : f32 to vector<8x128xf32>
    %66 = arith.subf %65, %64 : vector<8x128xf32>
    %c0_33 = arith.constant 0 : index
    %c1 = arith.constant 1 : index
    %c0_34 = arith.constant 0 : index
    %c0_35 = arith.constant 0 : index
    %67 = vector.load %arg10[%c0_33, %c1, %c0_34, %c0_35] : memref<1x4x8x128xf32, #tpu.memory_space<vmem>>, vector<1x1x8x128xf32>
    %68 = vector.shape_cast %67 : vector<1x1x8x128xf32> to vector<8x128xf32>
    %69 = arith.addf %68, %66 : vector<8x128xf32>
    %c0_36 = arith.constant 0 : index
    %c1_37 = arith.constant 1 : index
    %c0_38 = arith.constant 0 : index
    %c0_39 = arith.constant 0 : index
    %70 = vector.load %arg10[%c0_36, %c1_37, %c0_38, %c0_39] : memref<1x4x8x128xf32, #tpu.memory_space<vmem>>, vector<1x1x8x128xf32>
    %71 = vector.shape_cast %70 : vector<1x1x8x128xf32> to vector<8x128xf32>
    %72 = vector.shape_cast %69 : vector<8x128xf32> to vector<1x1x8x128xf32>
    tpu.vector_store %arg10[%c0_36, %c1_37, %c0_38, %c0_39], %72 {strides = array<i32>} : memref<1x4x8x128xf32, #tpu.memory_space<vmem>>, vector<1x1x8x128xf32>,
    %c0_40 = arith.constant 0 : index
    %c0_41 = arith.constant 0 : index
    %73 = vector.load %arg4[%c0_40, %c0_41] : memref<8x128xf32, #tpu.memory_space<vmem>>, vector<8x128xf32>
    %c0_42 = arith.constant 0 : index
    %c0_43 = arith.constant 0 : index
    %74 = vector.load %arg8[%c0_42, %c0_43] : memref<8x128xf32, #tpu.memory_space<vmem>>, vector<8x128xf32>
    %c0_i32_44 = arith.constant 0 : i32
    %75 = arith.addi %5, %c0_i32_44 : i32
    %c128_i32_45 = arith.constant 128 : i32
    %76 = arith.subi %c128_i32_45, %75 : i32
    %77 = vector.broadcast %76 : i32 to vector<8x128xi32>
    %78 = arith.cmpi slt, %10, %77 : vector<8x128xi32>
    %cst_46 = arith.constant 1.000000e+00 : f32
    %79 = vector.broadcast %cst_46 : f32 to vector<8x128xf32>
    %80 = arith.select %78, %73, %79 : vector<8x128xi1>, vector<8x128xf32>
    %cst_47 = arith.constant 1.000000e+00 : f32
    %81 = vector.broadcast %cst_47 : f32 to vector<8x128xf32>
    %82 = arith.select %78, %74, %81 : vector<8x128xi1>, vector<8x128xf32>
    %83 = math.log %80 : vector<8x128xf32>
    %cst_48 = arith.constant -1.000000e+02 : f32
    %84 = vector.broadcast %cst_48 : f32 to vector<8x128xf32>
    %85 = arith.maximumf %83, %84 : vector<8x128xf32>
    %cst_49 = arith.constant 1.000000e+00 : f32
    %86 = vector.broadcast %cst_49 : f32 to vector<8x128xf32>
    %87 = arith.subf %86, %80 : vector<8x128xf32>
    %88 = math.log %87 : vector<8x128xf32>
    %cst_50 = arith.constant -1.000000e+02 : f32
    %89 = vector.broadcast %cst_50 : f32 to vector<8x128xf32>
    %90 = arith.maximumf %88, %89 : vector<8x128xf32>
    %91 = arith.mulf %82, %85 : vector<8x128xf32>
    %cst_51 = arith.constant 1.000000e+00 : f32
    %92 = vector.broadcast %cst_51 : f32 to vector<8x128xf32>
    %93 = arith.subf %92, %82 : vector<8x128xf32>
    %94 = arith.mulf %93, %90 : vector<8x128xf32>
    %95 = arith.addf %91, %94 : vector<8x128xf32>
    %cst_52 = arith.constant 0.000000e+00 : f32
    %96 = vector.broadcast %cst_52 : f32 to vector<8x128xf32>
    %97 = arith.subf %96, %95 : vector<8x128xf32>
    %c0_53 = arith.constant 0 : index
    %c2 = arith.constant 2 : index
    %c0_54 = arith.constant 0 : index
    %c0_55 = arith.constant 0 : index
    %98 = vector.load %arg10[%c0_53, %c2, %c0_54, %c0_55] : memref<1x4x8x128xf32, #tpu.memory_space<vmem>>, vector<1x1x8x128xf32>
    %99 = vector.shape_cast %98 : vector<1x1x8x128xf32> to vector<8x128xf32>
    %100 = arith.addf %99, %97 : vector<8x128xf32>
    %c0_56 = arith.constant 0 : index
    %c2_57 = arith.constant 2 : index
    %c0_58 = arith.constant 0 : index
    %c0_59 = arith.constant 0 : index
    %101 = vector.load %arg10[%c0_56, %c2_57, %c0_58, %c0_59] : memref<1x4x8x128xf32, #tpu.memory_space<vmem>>, vector<1x1x8x128xf32>
    %102 = vector.shape_cast %101 : vector<1x1x8x128xf32> to vector<8x128xf32>
    %103 = vector.shape_cast %100 : vector<8x128xf32> to vector<1x1x8x128xf32>
    tpu.vector_store %arg10[%c0_56, %c2_57, %c0_58, %c0_59], %103 {strides = array<i32>} : memref<1x4x8x128xf32, #tpu.memory_space<vmem>>, vector<1x1x8x128xf32>,
    %c0_60 = arith.constant 0 : index
    %c0_61 = arith.constant 0 : index
    %104 = vector.load %arg5[%c0_60, %c0_61] : memref<8x128xf32, #tpu.memory_space<vmem>>, vector<8x128xf32>
    %c0_62 = arith.constant 0 : index
    %c0_63 = arith.constant 0 : index
    %105 = vector.load %arg9[%c0_62, %c0_63] : memref<8x128xf32, #tpu.memory_space<vmem>>, vector<8x128xf32>
    %c0_i32_64 = arith.constant 0 : i32
    %106 = arith.addi %5, %c0_i32_64 : i32
    %c128_i32_65 = arith.constant 128 : i32
    %107 = arith.subi %c128_i32_65, %106 : i32
    %108 = vector.broadcast %107 : i32 to vector<8x128xi32>
    %109 = arith.cmpi slt, %10, %108 : vector<8x128xi32>
    %cst_66 = arith.constant 1.000000e+00 : f32
    %110 = vector.broadcast %cst_66 : f32 to vector<8x128xf32>
    %111 = arith.select %109, %104, %110 : vector<8x128xi1>, vector<8x128xf32>
    %cst_67 = arith.constant 1.000000e+00 : f32
    %112 = vector.broadcast %cst_67 : f32 to vector<8x128xf32>
    %113 = arith.select %109, %105, %112 : vector<8x128xi1>, vector<8x128xf32>
    %114 = math.log %111 : vector<8x128xf32>
    %cst_68 = arith.constant -1.000000e+02 : f32
    %115 = vector.broadcast %cst_68 : f32 to vector<8x128xf32>
    %116 = arith.maximumf %114, %115 : vector<8x128xf32>
    %cst_69 = arith.constant 1.000000e+00 : f32
    %117 = vector.broadcast %cst_69 : f32 to vector<8x128xf32>
    %118 = arith.subf %117, %111 : vector<8x128xf32>
    %119 = math.log %118 : vector<8x128xf32>
    %cst_70 = arith.constant -1.000000e+02 : f32
    %120 = vector.broadcast %cst_70 : f32 to vector<8x128xf32>
    %121 = arith.maximumf %119, %120 : vector<8x128xf32>
    %122 = arith.mulf %113, %116 : vector<8x128xf32>
    %cst_71 = arith.constant 1.000000e+00 : f32
    %123 = vector.broadcast %cst_71 : f32 to vector<8x128xf32>
    %124 = arith.subf %123, %113 : vector<8x128xf32>
    %125 = arith.mulf %124, %121 : vector<8x128xf32>
    %126 = arith.addf %122, %125 : vector<8x128xf32>
    %cst_72 = arith.constant 0.000000e+00 : f32
    %127 = vector.broadcast %cst_72 : f32 to vector<8x128xf32>
    %128 = arith.subf %127, %126 : vector<8x128xf32>
    %c0_73 = arith.constant 0 : index
    %c3 = arith.constant 3 : index
    %c0_74 = arith.constant 0 : index
    %c0_75 = arith.constant 0 : index
    %129 = vector.load %arg10[%c0_73, %c3, %c0_74, %c0_75] : memref<1x4x8x128xf32, #tpu.memory_space<vmem>>, vector<1x1x8x128xf32>
    %130 = vector.shape_cast %129 : vector<1x1x8x128xf32> to vector<8x128xf32>
    %131 = arith.addf %130, %128 : vector<8x128xf32>
    %c0_76 = arith.constant 0 : index
    %c3_77 = arith.constant 3 : index
    %c0_78 = arith.constant 0 : index
    %c0_79 = arith.constant 0 : index
    %132 = vector.load %arg10[%c0_76, %c3_77, %c0_78, %c0_79] : memref<1x4x8x128xf32, #tpu.memory_space<vmem>>, vector<1x1x8x128xf32>
    %133 = vector.shape_cast %132 : vector<1x1x8x128xf32> to vector<8x128xf32>
    %134 = vector.shape_cast %131 : vector<8x128xf32> to vector<1x1x8x128xf32>
    tpu.vector_store %arg10[%c0_76, %c3_77, %c0_78, %c0_79], %134 {strides = array<i32>} : memref<1x4x8x128xf32, #tpu.memory_space<vmem>>, vector<1x1x8x128xf32>,
    return
  }
  func.func @transform_0(%arg0: i32, %arg1: i32) -> (i32, i32) {
    %c1_i32 = arith.constant 1 : i32
    %0 = arith.muli %arg0, %c1_i32 : i32
    %1 = arith.addi %0, %arg1 : i32
    %c0_i32 = arith.constant 0 : i32
    %2 = arith.minsi %1, %c0_i32 : i32
    %c0_i32_0 = arith.constant 0 : i32
    %c0_i32_1 = arith.constant 0 : i32
    return %2, %c0_i32_0 : i32, i32
  }
  func.func @transform_1(%arg0: i32, %arg1: i32) -> (i32, i32) {
    %c1_i32 = arith.constant 1 : i32
    %0 = arith.muli %arg0, %c1_i32 : i32
    %1 = arith.addi %0, %arg1 : i32
    %c0_i32 = arith.constant 0 : i32
    %2 = arith.minsi %1, %c0_i32 : i32
    %c0_i32_0 = arith.constant 0 : i32
    %c0_i32_1 = arith.constant 0 : i32
    return %2, %c0_i32_0 : i32, i32
  }
  func.func @transform_2(%arg0: i32, %arg1: i32) -> (i32, i32) {
    %c1_i32 = arith.constant 1 : i32
    %0 = arith.muli %arg0, %c1_i32 : i32
    %1 = arith.addi %0, %arg1 : i32
    %c0_i32 = arith.constant 0 : i32
    %2 = arith.minsi %1, %c0_i32 : i32
    %c0_i32_0 = arith.constant 0 : i32
    %c0_i32_1 = arith.constant 0 : i32
    return %2, %c0_i32_0 : i32, i32
  }
  func.func @transform_3(%arg0: i32, %arg1: i32) -> (i32, i32) {
    %c1_i32 = arith.constant 1 : i32
    %0 = arith.muli %arg0, %c1_i32 : i32
    %1 = arith.addi %0, %arg1 : i32
    %c0_i32 = arith.constant 0 : i32
    %2 = arith.minsi %1, %c0_i32 : i32
    %c0_i32_0 = arith.constant 0 : i32
    %c0_i32_1 = arith.constant 0 : i32
    return %2, %c0_i32_0 : i32, i32
  }
  func.func @transform_4(%arg0: i32, %arg1: i32) -> (i32, i32) {
    %c1_i32 = arith.constant 1 : i32
    %0 = arith.muli %arg0, %c1_i32 : i32
    %1 = arith.addi %0, %arg1 : i32
    %c0_i32 = arith.constant 0 : i32
    %2 = arith.minsi %1, %c0_i32 : i32
    %c0_i32_0 = arith.constant 0 : i32
    %c0_i32_1 = arith.constant 0 : i32
    return %2, %c0_i32_0 : i32, i32
  }
  func.func @transform_5(%arg0: i32, %arg1: i32) -> (i32, i32) {
    %c1_i32 = arith.constant 1 : i32
    %0 = arith.muli %arg0, %c1_i32 : i32
    %1 = arith.addi %0, %arg1 : i32
    %c0_i32 = arith.constant 0 : i32
    %2 = arith.minsi %1, %c0_i32 : i32
    %c0_i32_0 = arith.constant 0 : i32
    %c0_i32_1 = arith.constant 0 : i32
    return %2, %c0_i32_0 : i32, i32
  }
  func.func @transform_6(%arg0: i32, %arg1: i32) -> (i32, i32) {
    %c1_i32 = arith.constant 1 : i32
    %0 = arith.muli %arg0, %c1_i32 : i32
    %1 = arith.addi %0, %arg1 : i32
    %c0_i32 = arith.constant 0 : i32
    %2 = arith.minsi %1, %c0_i32 : i32
    %c0_i32_0 = arith.constant 0 : i32
    %c0_i32_1 = arith.constant 0 : i32
    return %2, %c0_i32_0 : i32, i32
  }
  func.func @transform_7(%arg0: i32, %arg1: i32) -> (i32, i32) {
    %c1_i32 = arith.constant 1 : i32
    %0 = arith.muli %arg0, %c1_i32 : i32
    %1 = arith.addi %0, %arg1 : i32
    %c0_i32 = arith.constant 0 : i32
    %2 = arith.minsi %1, %c0_i32 : i32
    %c0_i32_0 = arith.constant 0 : i32
    %c0_i32_1 = arith.constant 0 : i32
    return %2, %c0_i32_0 : i32, i32
  }
  func.func @transform_8(%arg0: i32, %arg1: i32) -> (i32, i32, i32, i32) {
    %c0_i32 = arith.constant 0 : i32
    %c0_i32_0 = arith.constant 0 : i32
    %c0_i32_1 = arith.constant 0 : i32
    %c0_i32_2 = arith.constant 0 : i32
    return %arg0, %c0_i32, %c0_i32_0, %c0_i32_1 : i32, i32, i32, i32
  }
}

</mosaic_0001>

<bundles_post_ra>
// kernel: tpu_custom_call.1
= control target key start
LH: loop header
LB: loop body
LE: loop exit
PB: predicated region body
PF: predicated region fallthrough
CT: control target
= control target key end

     0   :  { %13 = vsyncpa [#allocation3], 0  ;;  %s619_s0 = inlined_call_operand.hbm [shape: f32[8,128], index: 0, kind: input, shape index: {}]   ;;  %s620_s1 = inlined_call_operand.hbm [shape: f32[8,128], index: 1, kind: input, shape index: {}]   ;;  %s621_s2 = inlined_call_operand.hbm [shape: f32[8,128], index: 2, kind: input, shape index: {}]   ;;  %s622_s3 = inlined_call_operand.hbm [shape: f32[8,128], index: 3, kind: input, shape index: {}]   ;;  %s623_s4 = inlined_call_operand.hbm [shape: f32[8,128], index: 4, kind: input, shape index: {}]   ;;  %s624_s5 = inlined_call_operand.vmem [shape: f32[8,128], index: 5, kind: input, shape index: {}]   ;;  %s625_s6 = inlined_call_operand.hbm [shape: f32[8,128], index: 6, kind: input, shape index: {}]   ;;  %s626_s7 = inlined_call_operand.hbm [shape: f32[8,128], index: 7, kind: input, shape index: {}]   ;;  %s627_s8 = inlined_call_operand.hbm [shape: f32[1,4,8,128], index: 8, kind: output, shape index: {}]  }
   0x1   :  { %14 = vsyncpa [#allocation6], 0 }
   0x2   :  { %15 = vsyncpa [#allocation9], 0 }
   0x3   :  { %16 = vsyncpa [#allocation12], 0 }
   0x4   :  { %17 = vsyncpa [#allocation4], 0  ;;  %s529_s27 = smov [#allocation5]   ;;  %s530_s29 = smov [#allocation8]  }
   0x5   :  { %s44_s28 = sshll.u32 %s529_s27, 4  ;;  %s74_s30 = sshll.u32 %s530_s29, 4  ;;  %s45_s28 = int_to_ptr.vmem [resolvable:$true] %s44_s28  ;;  %s75_s30 = int_to_ptr.vmem [resolvable:$true] %s74_s30 }
   0x6   :  { %s367_s9 = scalar_lea.vmem %s45_s28, 128  ;;  %p372_p1 = scmp.lt.s32.totalorder %s45_s28, %s45_s28 }
   0x7   :  { %p368_p0 = scmp.ne.s32.totalorder %s45_s28, %s367_s9  ;;  %p373_p2 = scmp.lt.s32.totalorder %s367_s9, %s367_s9 }
   0x9   :  { %p374_p3 = por %p373_p2, %p372_p1 }
   0xb   :  { %p375_p4 = pnand %p374_p3, %p368_p0 }
   0xd   :  { %378 = shalt.err (!%p375_p4)
}
   0xe   :  { %47 = dma.hbm_to_vmem [thread:$0]  %s620_s1, 128, %s45_s28, [#allocation6]  }
   0xf   :  { %s387_s12 = scalar_lea.vmem %s75_s30, 128  ;;  %p392_p6 = scmp.lt.s32.totalorder %s75_s30, %s75_s30 }
  0x10   :  { %p388_p5 = scmp.ne.s32.totalorder %s75_s30, %s387_s12  ;;  %p393_p7 = scmp.lt.s32.totalorder %s387_s12, %s387_s12 }
  0x12   :  { %p394_p8 = por %p393_p7, %p392_p6 }
  0x14   :  { %p395_p9 = pnand %p394_p8, %p388_p5 }
  0x16   :  { %398 = shalt.err (!%p395_p9)
}
  0x17   :  { %77 = dma.hbm_to_vmem [thread:$0]  %s622_s3, 128, %s75_s30, [#allocation9]  }
  0x18   :  { %s531_s15 = smov [#allocation11]   ;;  %s532_s17 = smov [#allocation2]  }
  0x19   :  { %s116_s16 = sshll.u32 %s531_s15, 4  ;;  %s29_s18 = sshll.u32 %s532_s17, 4  ;;  %s117_s16 = int_to_ptr.vmem [resolvable:$true] %s116_s16  ;;  %s30_s18 = int_to_ptr.vmem [resolvable:$true] %s29_s18 }
  0x1a   :  { %s407_s19 = scalar_lea.vmem %s117_s16, 128  ;;  %p412_p11 = scmp.lt.s32.totalorder %s117_s16, %s117_s16 }
  0x1b   :  { %p408_p10 = scmp.ne.s32.totalorder %s117_s16, %s407_s19  ;;  %p413_p12 = scmp.lt.s32.totalorder %s407_s19, %s407_s19 }
  0x1d   :  { %p414_p13 = por %p413_p12, %p412_p11 }
  0x1f   :  { %p415_p0 = pnand %p414_p13, %p408_p10 }
  0x21   :  { %418 = shalt.err (!%p415_p0)
}
  0x22   :  { %119 = dma.hbm_to_vmem [thread:$0]  %s625_s6, 128, %s117_s16, [#allocation12]  }
  0x23   :  { %s427_s21 = scalar_lea.vmem %s30_s18, 128  ;;  %p432_p2 = scmp.lt.s32.totalorder %s30_s18, %s30_s18 }
  0x24   :  { %p428_p1 = scmp.ne.s32.totalorder %s30_s18, %s427_s21  ;;  %p433_p3 = scmp.lt.s32.totalorder %s427_s21, %s427_s21 }
  0x26   :  { %p434_p4 = por %p433_p3, %p432_p2 }
  0x28   :  { %p435_p5 = pnand %p434_p4, %p428_p1 }
  0x2a   :  { %438 = shalt.err (!%p435_p5)
}
  0x2b   :  { %32 = dma.hbm_to_vmem [thread:$0]  %s619_s0, 128, %s30_s18, [#allocation3]  }
  0x2c   :  { %s533_s23 = smov [#allocation7]   ;;  %s534_s25 = smov [#allocation10]  }
  0x2d   :  { %s59_s24 = sshll.u32 %s533_s23, 4  ;;  %s89_s26 = sshll.u32 %s534_s25, 4  ;;  %s60_s24 = int_to_ptr.vmem [resolvable:$true] %s59_s24  ;;  %s90_s26 = int_to_ptr.vmem [resolvable:$true] %s89_s26 }
  0x2e   :  { %s447_s27 = scalar_lea.vmem %s60_s24, 128  ;;  %p452_p7 = scmp.lt.s32.totalorder %s60_s24, %s60_s24 }
  0x2f   :  { %p448_p6 = scmp.ne.s32.totalorder %s60_s24, %s447_s27  ;;  %p453_p8 = scmp.lt.s32.totalorder %s447_s27, %s447_s27 }
  0x31   :  { %p454_p9 = por %p453_p8, %p452_p7 }
  0x33   :  { %p455_p10 = pnand %p454_p9, %p448_p6 }
  0x35   :  { %458 = shalt.err (!%p455_p10)
}
  0x36   :  { %62 = dma.hbm_to_vmem [thread:$0]  %s621_s2, 128, %s60_s24, [#allocation6]  }
  0x37   :  { %s467_s29 = scalar_lea.vmem %s90_s26, 128  ;;  %p472_p12 = scmp.lt.s32.totalorder %s90_s26, %s90_s26 }
  0x38   :  { %p468_p11 = scmp.ne.s32.totalorder %s90_s26, %s467_s29  ;;  %p473_p13 = scmp.lt.s32.totalorder %s467_s29, %s467_s29 }
  0x3a   :  { %p474_p0 = por %p473_p13, %p472_p12 }
  0x3c   :  { %p475_p1 = pnand %p474_p0, %p468_p11 }
  0x3e   :  { %478 = shalt.err (!%p475_p1)
}
  0x3f   :  { %92 = dma.hbm_to_vmem [thread:$0]  %s623_s4, 128, %s90_s26, [#allocation9]  }
  0x40   :  { %s535_s9 = smov [#allocation13]  }
  0x41   :  { %s131_s10 = sshll.u32 %s535_s9, 4  ;;  %s132_s10 = int_to_ptr.vmem [resolvable:$true] %s131_s10 }
  0x42   :  { %s487_s11 = scalar_lea.vmem %s132_s10, 128  ;;  %p492_p3 = scmp.lt.s32.totalorder %s132_s10, %s132_s10 }
  0x43   :  { %p488_p2 = scmp.ne.s32.totalorder %s132_s10, %s487_s11  ;;  %p493_p4 = scmp.lt.s32.totalorder %s487_s11, %s487_s11 }
  0x45   :  { %p494_p5 = por %p493_p4, %p492_p3 }
  0x47   :  { %p495_p6 = pnand %p494_p5, %p488_p2 }
  0x49   :  { %498 = shalt.err (!%p495_p6)
}
  0x4a   :  { %134 = dma.hbm_to_vmem [thread:$0]  %s626_s7, 128, %s132_s10, [#allocation12]  }
  0x4b   :  { %519 = dma.done.wait [#allocation3], 128  }
  0x4c   :  { %520 = vsyncadd [#allocation3], 4294967168 }
  0x4d   :  { %521 = dma.done.wait [#allocation6], 256  }
  0x4e   :  { %522 = vsyncadd [#allocation6], 4294967040 }
  0x4f   :  { %523 = dma.done.wait [#allocation9], 256  }
  0x50   :  { %524 = vsyncadd [#allocation9], 4294967040 }
  0x51   :  { %525 = dma.done.wait [#allocation12], 256  }
  0x52   :  { %526 = vsyncadd [#allocation12], 4294967040  ;;  %v204_v0 = vlaneseq  ;;  %v210_v5 = vld [vmem:[#allocation2] sm:$0xff]  ;;  %v232_v6 = vld [vmem:[#allocation5] sm:$0xff] }
  0x53   :  { %v252_v7 = vld [vmem:[#allocation7] sm:$0xff]  ;;  %v272_v10 = vld [vmem:[#allocation8] sm:$0xff]  ;;  %v211_v17 = vld [vmem:[#allocation10] sm:$0xff] }
  0x54   :  { %v205_v1 = vshrl.u32 %v204_v0, 7  ;;  %v208_v2 = vand.u32 127, %v204_v0  ;;  %v233_v18 = vld [vmem:[%s624_s5] sm:$0xff]  ;;  %v253_v21 = vld [vmem:[#allocation11] sm:$0xff]  ;;  %v273_v27 = vld [vmem:[#allocation13] sm:$0xff]  ;;  %s536_s5 = smov [#allocation14]  }
  0x55   :  { %s297_s13 = sshll.u32 %s536_s5, 4  ;;  %s298_s13 = int_to_ptr.vmem [resolvable:$true] %s297_s13 }
  0x56   :  { %v206_v3 = vmul.u32 128, %v205_v1  ;;  %s499_s14 = scalar_lea.vmem %s298_s13, 512  ;;  %p504_p8 = scmp.lt.s32.totalorder %s298_s13, %s298_s13 }
  0x57   :  { %p500_p7 = scmp.ne.s32.totalorder %s298_s13, %s499_s14  ;;  %p505_p9 = scmp.lt.s32.totalorder %s499_s14, %s499_s14 }
  0x58   :  { %v209_v4 = vadd.s32 %v208_v2, %v206_v3 }
  0x59   :  { %p506_p10 = por %p505_p9, %p504_p8 }
  0x5a   :  { %vm214_vm0 = vcmp.lt.s32.totalorder %v209_v4, 128 }
  0x5b   :  { %v215_v8 = vsel %vm214_vm0, %v210_v5, 1.0  ;;  %v234_v9 = vsel %vm214_vm0, %v232_v6, 1.0  ;;  %v254_v13 = vsel %vm214_vm0, %v252_v7, 1.0  ;;  %v274_v15 = vsel %vm214_vm0, %v272_v10, 1.0  ;;  %p507_p11 = pnand %p506_p10, %p500_p7 }
  0x5c   :  { %343 = vlog2.f32 %v215_v8  ;;  %v220_v11 = vsub.f32 1.0, %v215_v8  ;;  %v239_v12 = vsub.f32 1.0, %v234_v9  ;;  %v259_v14 = vsub.f32 1.0, %v254_v13 }
  0x5d   :  { %345 = vlog2.f32 %v234_v9  ;;  %v279_v16 = vsub.f32 1.0, %v274_v15  ;;  %v216_v20 = vsel %vm214_vm0, %v211_v17, 1.0  ;;  %v235_v24 = vsel %vm214_vm0, %v233_v18, 1.0 }
  0x5e   :  { %347 = vlog2.f32 %v220_v11  ;;  %v225_v31 = vsub.f32 1.0, %v216_v20  ;;  %v255_v32 = vsel %vm214_vm0, %v253_v21, 1.0  ;;  %v244_v36 = vsub.f32 1.0, %v235_v24 }
  0x5f   :  { %349 = vlog2.f32 %v239_v12  ;;  %v275_v41 = vsel %vm214_vm0, %v273_v27, 1.0  ;;  %v264_v46 = vsub.f32 1.0, %v255_v32 }
  0x60   :  { %351 = vlog2.f32 %v254_v13  ;;  %v284_v54 = vsub.f32 1.0, %v275_v41 }
  0x61   :  { %353 = vlog2.f32 %v259_v14 }
  0x62   :  { %355 = vlog2.f32 %v274_v15 }
  0x63   :  { %357 = vlog2.f32 %v279_v16 }
  0x69   :  { %v344_v19 = vpop.eup %343 }
  0x6a   :  { %v346_v22 = vpop.eup %345  ;;  %v218_v23 = vmul.f32 0.6931472, %v344_v19 }
  0x6b   :  { %v348_v25 = vpop.eup %347  ;;  %v237_v26 = vmul.f32 0.6931472, %v346_v22 }
  0x6c   :  { %v350_v28 = vpop.eup %349  ;;  %v219_v29 = vmax.f32 %v218_v23, -100.0  ;;  %v222_v30 = vmul.f32 0.6931472, %v348_v25 }
  0x6d   :  { %v352_v33 = vpop.eup %351  ;;  %v238_v34 = vmax.f32 %v237_v26, -100.0  ;;  %v241_v35 = vmul.f32 0.6931472, %v350_v28 }
  0x6e   :  { %v354_v37 = vpop.eup %353  ;;  %v223_v38 = vmax.f32 %v222_v30, -100.0  ;;  %v224_v39 = vmul.f32 %v219_v29, %v216_v20  ;;  %v257_v40 = vmul.f32 0.6931472, %v352_v33 }
  0x6f   :  { %v356_v42 = vpop.eup %355  ;;  %v242_v43 = vmax.f32 %v241_v35, -100.0  ;;  %v243_v44 = vmul.f32 %v238_v34, %v235_v24  ;;  %v261_v45 = vmul.f32 0.6931472, %v354_v37 }
  0x70   :  { %v358_v47 = vpop.eup %357  ;;  %v226_v48 = vmul.f32 %v225_v31, %v223_v38  ;;  %v258_v49 = vmax.f32 %v257_v40, -100.0  ;;  %v277_v50 = vmul.f32 0.6931472, %v356_v42 }
  0x71   :  { %v245_v51 = vmul.f32 %v244_v36, %v242_v43  ;;  %v262_v52 = vmax.f32 %v261_v45, -100.0  ;;  %v281_v53 = vmul.f32 0.6931472, %v358_v47 }
  0x72   :  { %v227_v55 = vadd.f32 %v226_v48, %v224_v39  ;;  %v263_v56 = vmul.f32 %v258_v49, %v255_v32  ;;  %v278_v57 = vmax.f32 %v277_v50, -100.0 }
  0x73   :  { %v246_v58 = vadd.f32 %v245_v51, %v243_v44  ;;  %v265_v59 = vmul.f32 %v264_v46, %v262_v52  ;;  %v282_v60 = vmax.f32 %v281_v53, -100.0 }
  0x74   :  { %v228_v61 = vsub.f32 0.0, %v227_v55  ;;  %v283_v62 = vmul.f32 %v278_v57, %v275_v41 }
  0x75   :  { %v247_v63 = vsub.f32 0.0, %v246_v58  ;;  %v266_v0 = vadd.f32 %v265_v59, %v263_v56  ;;  %v285_v1 = vmul.f32 %v284_v54, %v282_v60 }
  0x76   :  { %231 = vst [vmem:[#allocation14] sm:$0xff] %v228_v61 }
  0x77   :  { %v267_v2 = vsub.f32 0.0, %v266_v0  ;;  %v286_v3 = vadd.f32 %v285_v1, %v283_v62  ;;  %251 = vst [vmem:[#allocation14 + $0x8] sm:$0xff] %v247_v63 }
  0x79   :  { %v287_v4 = vsub.f32 0.0, %v286_v3  ;;  %271 = vst [vmem:[#allocation14 + $0x10] sm:$0xff] %v267_v2 }
  0x7b   :  { %291 = vst [vmem:[#allocation14 + $0x18] sm:$0xff] %v287_v4 }
  0x7c   :  { %510 = shalt.err (!%p507_p11)
}
  0x7d   :  { %s537_s15 = smov 128   ;;  %s538_s16 = smov 8  }
  0x7e   :  { %303 = dma.vmem_to_hbm [thread:$0]  %s298_s13, 512, %s627_s8, [#allocation4], %s537_s15, %s537_s15, %s538_s16  }
  0x7f   :  { %527 = dma.done.wait [#allocation4], 512  }
  0x80   :  { %528 = vsyncadd [#allocation4], 4294966784 }
  0x81   :  { %307 = vsyncpa [#allocation3], 1 }
  0x82   :  { %308 = vsyncpa [#allocation6], 1 }
  0x83   :  { %309 = vsyncpa [#allocation9], 1 }
  0x84   :  { %310 = vsyncpa [#allocation12], 1 }
  0x85   :  { %311 = vsyncpa [#allocation4], 1 }

</bundles_post_ra>
